<compile_context>
chip_gen: v5e
topology: v5e:2x2
jax: 0.10.0
libtpu: 0.0.40
codegen_flags: <defaults>
</compile_context>

<pallas_src>
import functools

import jax
import jax.numpy as jnp
import numpy as np
from jax.experimental import pallas as pl
from jax.experimental.pallas import tpu as pltpu

LANES = 128                                   # vreg lane width
CHUNK_ROWS = 64                               # rows per unrolled inner chunk
_VMEM_TILE_BUDGET = 24 * 1024 * 1024          # double-buffered input-tile budget
_VMEM_LIMIT = 32 * 1024 * 1024                # scoped VMEM limit (safe on v5e/v6e/v7x)


def _dice_count_kernel(x_ref, t_ref, o_ref, *, num_classes, tile_rows, chunk_rows):
    """Accumulates per-lane (intersection, pred-count, target-count) counts.

    x_ref: (C, TR, 128)       logits tile (native dtype: f32 or bf16)
    t_ref: (TR, 128)          int32 label tile
    o_ref: (3*(C-1), 128) f32 per-lane counts; VMEM-resident across the row-tile
                              (reduction) axis, written to HBM once per
                              (batch, segment).
    """
    r_id = pl.program_id(2)
    ncm1 = num_classes - 1

    @pl.when(r_id == 0)
    def _init():
        o_ref[...] = jnp.zeros_like(o_ref)

    # Per-lane running counts for this grid step live in vregs: the hot loop
    # below does no VMEM read-modify-write at all.
    carry = [jnp.zeros((1, LANES), jnp.float32) for _ in range(3 * ncm1)]

    n_chunks = tile_rows // chunk_rows
    # Fully unrolled, static slice offsets (full LLO scheduling visibility).
    for j in range(n_chunks):
        r0 = j * chunk_rows

        tgt = t_ref[pl.ds(r0, chunk_rows), :]                    # (CR, 128)

        # Channel argmax, first-occurrence tie-break (matches torch.max/argmax).
        best_val = x_ref[0, pl.ds(r0, chunk_rows), :]
        best_idx = jnp.zeros(best_val.shape, jnp.int32)
        for c in range(1, num_classes):
            xc = x_ref[c, pl.ds(r0, chunk_rows), :]
            better = xc > best_val
            best_val = jnp.where(better, xc, best_val)
            best_idx = jnp.where(better, jnp.int32(c), best_idx)

        for k in range(1, num_classes):
            pk = (best_idx == k).astype(jnp.float32)
            tk = (tgt == k).astype(jnp.float32)
            ik = pk * tk
            i = k - 1
            # Sublane reductions go to the otherwise-idle XLU; carries stay in
            # vregs, so the only VMEM traffic in this loop is the input loads.
            carry[0 * ncm1 + i] += jnp.sum(ik, axis=0, keepdims=True)
            carry[1 * ncm1 + i] += jnp.sum(pk, axis=0, keepdims=True)
            carry[2 * ncm1 + i] += jnp.sum(tk, axis=0, keepdims=True)

    # A handful of tiny RMWs once per grid step (negligible vs. the hot loop).
    for idx in range(3 * ncm1):
        o_ref[pl.ds(idx, 1), :] += carry[idx]


def _tail_counts(x_tail, t_tail, num_classes):
    """Plain-JAX counts for the small ragged tail (less than one row tile)."""
    pred = jnp.argmax(x_tail, axis=1)                            # (B, M)
    ks = jnp.arange(1, num_classes, dtype=jnp.int32).reshape(1, num_classes - 1, 1)
    pk = pred[:, None, :] == ks                                  # (B, C-1, M)
    tk = t_tail[:, None, :] == ks
    inter = jnp.sum(pk & tk, axis=-1).astype(jnp.float32)
    psum = jnp.sum(pk, axis=-1).astype(jnp.float32)
    tsum = jnp.sum(tk, axis=-1).astype(jnp.float32)
    return inter, psum, tsum


def dice_forward(inputs, target, *, eps=1e-8, ifaverage=True, tile_rows=1024):
    """Pallas implementation of Dice.forward.

    inputs: [B, C, *spatial] class scores (f32 or bf16); target: [B, *spatial] ints.
    Returns shape (1,) if ifaverage else (B, C-1).
    """
    B, C = int(inputs.shape[0]), int(inputs.shape[1])
    assert C >= 2, "need at least one foreground class"
    N = int(np.prod(inputs.shape[2:]))
    assert int(target.shape[0]) == B and int(np.prod(target.shape[1:])) == N

    x3 = inputs.reshape(B, C, N)                  # free reshape (no copy)
    t2 = target.reshape(B, N)
    if t2.dtype != jnp.int32:
        t2 = t2.astype(jnp.int32)                 # labels are tiny vs. logits

    rows = N // LANES
    n128 = rows * LANES

    inter = jnp.zeros((B, C - 1), jnp.float32)
    psum = jnp.zeros((B, C - 1), jnp.float32)
    tsum = jnp.zeros((B, C - 1), jnp.float32)

    n_main = 0
    if rows > 0:
        chunk = min(CHUNK_ROWS, rows)
        tr = max(chunk, (min(int(tile_rows), rows) // chunk) * chunk)

        # Keep double-buffered input tiles within a conservative VMEM budget.
        x_item = np.dtype(x3.dtype).itemsize

        def _tile_bytes(trr):
            return 2 * trr * LANES * (C * x_item + 4)

        while tr > chunk and _tile_bytes(tr) > _VMEM_TILE_BUDGET:
            tr = max(chunk, (tr // (2 * chunk)) * chunk)

        tiles_total = rows // tr
        # Extra "parallel" axis so v7x's two TensorCores both get work when the
        # batch axis alone is odd; harmless on single-TC chips.
        n_seg = 2 if (B % 2 == 1 and tiles_total >= 2) else 1
        tiles_per_seg = tiles_total // n_seg
        tiles_used = tiles_per_seg * n_seg
        rows_main = tiles_used * tr
        n_main = rows_main * LANES

        if n128 == N:
            x4 = x3.reshape(B, C, rows, LANES)    # free (no copy)
            t3 = t2.reshape(B, rows, LANES)
        else:
            # Rare non-lane-aligned case: one extra pass over the 128-aligned
            # prefix is unavoidable to obtain the lane-dense layout.
            x4 = jax.lax.slice_in_dim(x3, 0, n128, axis=2).reshape(B, C, rows, LANES)
            t3 = jax.lax.slice_in_dim(t2, 0, n128, axis=1).reshape(B, rows, LANES)

        n_stats = 3 * (C - 1)
        kernel = functools.partial(_dice_count_kernel, num_classes=C,
                                   tile_rows=tr, chunk_rows=chunk)

        counts = pl.pallas_call(
            kernel,
            out_shape=jax.ShapeDtypeStruct((B, n_seg, n_stats, LANES), jnp.float32),
            grid_spec=pltpu.PrefetchScalarGridSpec(
                num_scalar_prefetch=0,
                grid=(B, n_seg, tiles_per_seg),
                in_specs=[
                    pl.BlockSpec((None, C, tr, LANES),
                                 lambda b, s, r: (b, 0, s * tiles_per_seg + r, 0)),
                    pl.BlockSpec((None, tr, LANES),
                                 lambda b, s, r: (b, s * tiles_per_seg + r, 0)),
                ],
                out_specs=pl.BlockSpec((None, None, n_stats, LANES),
                                       lambda b, s, r: (b, s, 0, 0)),
            ),
            compiler_params=pltpu.CompilerParams(
                dimension_semantics=("parallel", "parallel", "arbitrary"),
                vmem_limit_bytes=_VMEM_LIMIT),
        )(x4, t3)

        # Tiny final reductions in plain JAX (per-lane counts are exact in f32
        # for any realistic volume; see review note about the 2^24 bound).
        stats = jnp.sum(counts, axis=(1, 3)).reshape(B, 3, C - 1)
        inter = inter + stats[:, 0]
        psum = psum + stats[:, 1]
        tsum = tsum + stats[:, 2]

    if n_main < N:
        ti, tp, tt = _tail_counts(
            jax.lax.slice_in_dim(x3, n_main, N, axis=2),
            jax.lax.slice_in_dim(t2, n_main, N, axis=1), C)
        inter = inter + ti
        psum = psum + tp
        tsum = tsum + tt

    dice = (2.0 * inter + eps) / (psum + tsum + eps)             # (B, C-1)
    if ifaverage:
        return jnp.mean(jnp.mean(dice, axis=0), axis=0, keepdims=True)
    return dice


# Pure-JAX reference mirroring the PyTorch forward exactly (for verification).
def dice_ref(inputs, target, eps=1e-8, ifaverage=True):
    B, C = inputs.shape[0], inputs.shape[1]
    x = inputs.reshape(B, C, -1)
    t = target.reshape(B, -1)
    pred = jnp.argmax(x, axis=1)
    cols = []
    for k in range(1, C):
        ti = t == k
        pi = pred == k
        i = jnp.sum(jnp.logical_and(ti, pi), axis=1).astype(jnp.float32)
        u = (jnp.sum(ti, axis=1) + jnp.sum(pi, axis=1)).astype(jnp.float32)
        cols.append((2.0 * i + eps) / (u + eps))
    dice = jnp.stack(cols, axis=1)
    if ifaverage:
        return jnp.mean(jnp.mean(dice, axis=0), axis=0, keepdims=True)
    return dice


if __name__ == "__main__":
    key = jax.random.PRNGKey(0)
    k1, k2, k3, k4 = jax.random.split(key, 4)

    # Config 1: typical volumetric use (even batch, lane-aligned spatial size).
    B, C, D, H, W = 2, 4, 16, 16, 16
    logits = jax.random.normal(k1, (B, C, D, H, W), dtype=jnp.float32)
    labels = jax.random.randint(k2, (B, D, H, W), 0, C, dtype=jnp.int32)
    out = jax.block_until_ready(jax.jit(dice_forward)(logits, labels))
    ref = dice_ref(logits, labels)
    np.testing.assert_allclose(np.asarray(out), np.asarray(ref),
                               rtol=1e-6, atol=1e-6)
    assert out.shape == (1,)

    # Config 2: odd batch (extra parallel segment axis), several row tiles
    # (cross-tile output accumulation) and a ragged tail handled in plain JAX.
    B2, C2 = 1, 3
    logits2 = jax.random.normal(k3, (B2, C2, 2, 130, 128), dtype=jnp.float32)
    labels2 = jax.random.randint(k4, (B2, 2, 130, 128), 0, C2, dtype=jnp.int32)
    f2 = jax.jit(functools.partial(dice_forward, tile_rows=64))
    out2 = jax.block_until_ready(f2(logits2, labels2))
    ref2 = dice_ref(logits2, labels2)
    np.testing.assert_allclose(np.asarray(out2), np.asarray(ref2),
                               rtol=1e-6, atol=1e-6)

    print("KERNEL_OK")
</pallas_src>

<mosaic_0001>
module attributes {stable_mosaic.version = 11 : i64} {
  func.func @_dice_count_kernel(%arg0: i32, %arg1: i32, %arg2: i32, %arg3: memref<1x4x32x128xf32, #tpu.memory_space<vmem>>, %arg4: memref<1x32x128xi32, #tpu.memory_space<vmem>>, %arg5: memref<1x1x9x128xf32, #tpu.memory_space<vmem>>) attributes {dimension_semantics = [#tpu.dimension_semantics<parallel>, #tpu.dimension_semantics<parallel>, #tpu.dimension_semantics<arbitrary>], iteration_bounds = array<i64: 2, 1, 1>, scalar_prefetch = 0 : i64, scratch_operands = 0 : i64, tpu.core_type = #tpu.core_type<tc>, window_params = [{transform_indices = @transform_0, window_bounds = array<i64: 1, 4, 32, 128>}, {transform_indices = @transform_1, window_bounds = array<i64: 1, 32, 128>}, {transform_indices = @transform_2, window_bounds = array<i64: 1, 1, 9, 128>}]} {
    %c0_i32 = arith.constant 0 : i32
    %0 = arith.cmpi eq, %arg2, %c0_i32 : i32
    %1 = arith.extui %0 : i1 to i32
    %c0_i32_0 = arith.constant 0 : i32
    %2 = arith.cmpi ne, %1, %c0_i32_0 : i32
    scf.if %2 {
      %cst_107 = arith.constant 0.000000e+00 : f32
      %142 = vector.broadcast %cst_107 : f32 to vector<9x128xf32>
      %c0_108 = arith.constant 0 : index
      %c0_109 = arith.constant 0 : index
      %c0_110 = arith.constant 0 : index
      %c0_111 = arith.constant 0 : index
      %143 = vector.load %arg5[%c0_108, %c0_109, %c0_110, %c0_111] : memref<1x1x9x128xf32, #tpu.memory_space<vmem>>, vector<1x1x9x128xf32>
      %144 = vector.shape_cast %143 : vector<1x1x9x128xf32> to vector<9x128xf32>
      %145 = vector.shape_cast %142 : vector<9x128xf32> to vector<1x1x9x128xf32>
      tpu.vector_store %arg5[%c0_108, %c0_109, %c0_110, %c0_111], %145 {strides = array<i32>} : memref<1x1x9x128xf32, #tpu.memory_space<vmem>>, vector<1x1x9x128xf32>,
    } else {
    }
    %cst = arith.constant 0.000000e+00 : f32
    %3 = vector.broadcast %cst : f32 to vector<1x128xf32>
    %cst_1 = arith.constant 0.000000e+00 : f32
    %4 = vector.broadcast %cst_1 : f32 to vector<1x128xf32>
    %cst_2 = arith.constant 0.000000e+00 : f32
    %5 = vector.broadcast %cst_2 : f32 to vector<1x128xf32>
    %cst_3 = arith.constant 0.000000e+00 : f32
    %6 = vector.broadcast %cst_3 : f32 to vector<1x128xf32>
    %cst_4 = arith.constant 0.000000e+00 : f32
    %7 = vector.broadcast %cst_4 : f32 to vector<1x128xf32>
    %cst_5 = arith.constant 0.000000e+00 : f32
    %8 = vector.broadcast %cst_5 : f32 to vector<1x128xf32>
    %cst_6 = arith.constant 0.000000e+00 : f32
    %9 = vector.broadcast %cst_6 : f32 to vector<1x128xf32>
    %cst_7 = arith.constant 0.000000e+00 : f32
    %10 = vector.broadcast %cst_7 : f32 to vector<1x128xf32>
    %cst_8 = arith.constant 0.000000e+00 : f32
    %11 = vector.broadcast %cst_8 : f32 to vector<1x128xf32>
    %c0 = arith.constant 0 : index
    %c0_9 = arith.constant 0 : index
    %c0_10 = arith.constant 0 : index
    %12 = vector.load %arg4[%c0, %c0_9, %c0_10] : memref<1x32x128xi32, #tpu.memory_space<vmem>>, vector<1x32x128xi32>
    %13 = vector.shape_cast %12 : vector<1x32x128xi32> to vector<32x128xi32>
    %c0_11 = arith.constant 0 : index
    %c0_12 = arith.constant 0 : index
    %c0_13 = arith.constant 0 : index
    %c0_14 = arith.constant 0 : index
    %14 = vector.load %arg3[%c0_11, %c0_12, %c0_13, %c0_14] : memref<1x4x32x128xf32, #tpu.memory_space<vmem>>, vector<1x1x32x128xf32>
    %15 = vector.shape_cast %14 : vector<1x1x32x128xf32> to vector<32x128xf32>
    %c0_i32_15 = arith.constant 0 : i32
    %16 = vector.broadcast %c0_i32_15 : i32 to vector<32x128xi32>
    %c0_16 = arith.constant 0 : index
    %c1 = arith.constant 1 : index
    %c0_17 = arith.constant 0 : index
    %c0_18 = arith.constant 0 : index
    %17 = vector.load %arg3[%c0_16, %c1, %c0_17, %c0_18] : memref<1x4x32x128xf32, #tpu.memory_space<vmem>>, vector<1x1x32x128xf32>
    %18 = vector.shape_cast %17 : vector<1x1x32x128xf32> to vector<32x128xf32>
    %19 = arith.cmpf ogt, %18, %15 : vector<32x128xf32>
    %20 = arith.select %19, %18, %15 : vector<32x128xi1>, vector<32x128xf32>
    %c1_i32 = arith.constant 1 : i32
    %21 = vector.broadcast %c1_i32 : i32 to vector<32x128xi32>
    %22 = arith.select %19, %21, %16 : vector<32x128xi1>, vector<32x128xi32>
    %c0_19 = arith.constant 0 : index
    %c2 = arith.constant 2 : index
    %c0_20 = arith.constant 0 : index
    %c0_21 = arith.constant 0 : index
    %23 = vector.load %arg3[%c0_19, %c2, %c0_20, %c0_21] : memref<1x4x32x128xf32, #tpu.memory_space<vmem>>, vector<1x1x32x128xf32>
    %24 = vector.shape_cast %23 : vector<1x1x32x128xf32> to vector<32x128xf32>
    %25 = arith.cmpf ogt, %24, %20 : vector<32x128xf32>
    %26 = arith.select %25, %24, %20 : vector<32x128xi1>, vector<32x128xf32>
    %c2_i32 = arith.constant 2 : i32
    %27 = vector.broadcast %c2_i32 : i32 to vector<32x128xi32>
    %28 = arith.select %25, %27, %22 : vector<32x128xi1>, vector<32x128xi32>
    %c0_22 = arith.constant 0 : index
    %c3 = arith.constant 3 : index
    %c0_23 = arith.constant 0 : index
    %c0_24 = arith.constant 0 : index
    %29 = vector.load %arg3[%c0_22, %c3, %c0_23, %c0_24] : memref<1x4x32x128xf32, #tpu.memory_space<vmem>>, vector<1x1x32x128xf32>
    %30 = vector.shape_cast %29 : vector<1x1x32x128xf32> to vector<32x128xf32>
    %31 = arith.cmpf ogt, %30, %26 : vector<32x128xf32>
    %c3_i32 = arith.constant 3 : i32
    %32 = vector.broadcast %c3_i32 : i32 to vector<32x128xi32>
    %33 = arith.select %31, %32, %28 : vector<32x128xi1>, vector<32x128xi32>
    %c1_i32_25 = arith.constant 1 : i32
    %34 = vector.broadcast %c1_i32_25 : i32 to vector<32x128xi32>
    %35 = arith.cmpi eq, %33, %34 : vector<32x128xi32>
    %36 = arith.extui %35 : vector<32x128xi1> to vector<32x128xi32>
    %37 = arith.sitofp %36 : vector<32x128xi32> to vector<32x128xf32>
    %c1_i32_26 = arith.constant 1 : i32
    %38 = vector.broadcast %c1_i32_26 : i32 to vector<32x128xi32>
    %39 = arith.cmpi eq, %13, %38 : vector<32x128xi32>
    %40 = arith.extui %39 : vector<32x128xi1> to vector<32x128xi32>
    %41 = arith.sitofp %40 : vector<32x128xi32> to vector<32x128xf32>
    %42 = arith.mulf %37, %41 : vector<32x128xf32>
    %cst_27 = arith.constant dense<0.000000e+00> : vector<128xf32>
    %43 = vector.multi_reduction <add>, %42, %cst_27 [0] : vector<32x128xf32> to vector<128xf32>
    %44 = vector.shape_cast %43 : vector<128xf32> to vector<1x128xf32>
    %45 = arith.addf %3, %44 : vector<1x128xf32>
    %cst_28 = arith.constant dense<0.000000e+00> : vector<128xf32>
    %46 = vector.multi_reduction <add>, %37, %cst_28 [0] : vector<32x128xf32> to vector<128xf32>
    %47 = vector.shape_cast %46 : vector<128xf32> to vector<1x128xf32>
    %48 = arith.addf %6, %47 : vector<1x128xf32>
    %cst_29 = arith.constant dense<0.000000e+00> : vector<128xf32>
    %49 = vector.multi_reduction <add>, %41, %cst_29 [0] : vector<32x128xf32> to vector<128xf32>
    %50 = vector.shape_cast %49 : vector<128xf32> to vector<1x128xf32>
    %51 = arith.addf %9, %50 : vector<1x128xf32>
    %c2_i32_30 = arith.constant 2 : i32
    %52 = vector.broadcast %c2_i32_30 : i32 to vector<32x128xi32>
    %53 = arith.cmpi eq, %33, %52 : vector<32x128xi32>
    %54 = arith.extui %53 : vector<32x128xi1> to vector<32x128xi32>
    %55 = arith.sitofp %54 : vector<32x128xi32> to vector<32x128xf32>
    %c2_i32_31 = arith.constant 2 : i32
    %56 = vector.broadcast %c2_i32_31 : i32 to vector<32x128xi32>
    %57 = arith.cmpi eq, %13, %56 : vector<32x128xi32>
    %58 = arith.extui %57 : vector<32x128xi1> to vector<32x128xi32>
    %59 = arith.sitofp %58 : vector<32x128xi32> to vector<32x128xf32>
    %60 = arith.mulf %55, %59 : vector<32x128xf32>
    %cst_32 = arith.constant dense<0.000000e+00> : vector<128xf32>
    %61 = vector.multi_reduction <add>, %60, %cst_32 [0] : vector<32x128xf32> to vector<128xf32>
    %62 = vector.shape_cast %61 : vector<128xf32> to vector<1x128xf32>
    %63 = arith.addf %4, %62 : vector<1x128xf32>
    %cst_33 = arith.constant dense<0.000000e+00> : vector<128xf32>
    %64 = vector.multi_reduction <add>, %55, %cst_33 [0] : vector<32x128xf32> to vector<128xf32>
    %65 = vector.shape_cast %64 : vector<128xf32> to vector<1x128xf32>
    %66 = arith.addf %7, %65 : vector<1x128xf32>
    %cst_34 = arith.constant dense<0.000000e+00> : vector<128xf32>
    %67 = vector.multi_reduction <add>, %59, %cst_34 [0] : vector<32x128xf32> to vector<128xf32>
    %68 = vector.shape_cast %67 : vector<128xf32> to vector<1x128xf32>
    %69 = arith.addf %10, %68 : vector<1x128xf32>
    %c3_i32_35 = arith.constant 3 : i32
    %70 = vector.broadcast %c3_i32_35 : i32 to vector<32x128xi32>
    %71 = arith.cmpi eq, %33, %70 : vector<32x128xi32>
    %72 = arith.extui %71 : vector<32x128xi1> to vector<32x128xi32>
    %73 = arith.sitofp %72 : vector<32x128xi32> to vector<32x128xf32>
    %c3_i32_36 = arith.constant 3 : i32
    %74 = vector.broadcast %c3_i32_36 : i32 to vector<32x128xi32>
    %75 = arith.cmpi eq, %13, %74 : vector<32x128xi32>
    %76 = arith.extui %75 : vector<32x128xi1> to vector<32x128xi32>
    %77 = arith.sitofp %76 : vector<32x128xi32> to vector<32x128xf32>
    %78 = arith.mulf %73, %77 : vector<32x128xf32>
    %cst_37 = arith.constant dense<0.000000e+00> : vector<128xf32>
    %79 = vector.multi_reduction <add>, %78, %cst_37 [0] : vector<32x128xf32> to vector<128xf32>
    %80 = vector.shape_cast %79 : vector<128xf32> to vector<1x128xf32>
    %81 = arith.addf %5, %80 : vector<1x128xf32>
    %cst_38 = arith.constant dense<0.000000e+00> : vector<128xf32>
    %82 = vector.multi_reduction <add>, %73, %cst_38 [0] : vector<32x128xf32> to vector<128xf32>
    %83 = vector.shape_cast %82 : vector<128xf32> to vector<1x128xf32>
    %84 = arith.addf %8, %83 : vector<1x128xf32>
    %cst_39 = arith.constant dense<0.000000e+00> : vector<128xf32>
    %85 = vector.multi_reduction <add>, %77, %cst_39 [0] : vector<32x128xf32> to vector<128xf32>
    %86 = vector.shape_cast %85 : vector<128xf32> to vector<1x128xf32>
    %87 = arith.addf %11, %86 : vector<1x128xf32>
    %c0_40 = arith.constant 0 : index
    %c0_41 = arith.constant 0 : index
    %c0_42 = arith.constant 0 : index
    %c0_43 = arith.constant 0 : index
    %88 = vector.load %arg5[%c0_40, %c0_41, %c0_42, %c0_43] : memref<1x1x9x128xf32, #tpu.memory_space<vmem>>, vector<1x1x1x128xf32>
    %89 = vector.shape_cast %88 : vector<1x1x1x128xf32> to vector<1x128xf32>
    %90 = arith.addf %89, %45 : vector<1x128xf32>
    %c0_44 = arith.constant 0 : index
    %c0_45 = arith.constant 0 : index
    %c0_46 = arith.constant 0 : index
    %c0_47 = arith.constant 0 : index
    %91 = vector.load %arg5[%c0_44, %c0_45, %c0_46, %c0_47] : memref<1x1x9x128xf32, #tpu.memory_space<vmem>>, vector<1x1x1x128xf32>
    %92 = vector.shape_cast %91 : vector<1x1x1x128xf32> to vector<1x128xf32>
    %93 = vector.shape_cast %90 : vector<1x128xf32> to vector<1x1x1x128xf32>
    tpu.vector_store %arg5[%c0_44, %c0_45, %c0_46, %c0_47], %93 {strides = array<i32>} : memref<1x1x9x128xf32, #tpu.memory_space<vmem>>, vector<1x1x1x128xf32>,
    %c0_48 = arith.constant 0 : index
    %c0_49 = arith.constant 0 : index
    %c1_50 = arith.constant 1 : index
    %c0_51 = arith.constant 0 : index
    %94 = vector.load %arg5[%c0_48, %c0_49, %c1_50, %c0_51] : memref<1x1x9x128xf32, #tpu.memory_space<vmem>>, vector<1x1x1x128xf32>
    %95 = vector.shape_cast %94 : vector<1x1x1x128xf32> to vector<1x128xf32>
    %96 = arith.addf %95, %63 : vector<1x128xf32>
    %c0_52 = arith.constant 0 : index
    %c0_53 = arith.constant 0 : index
    %c1_54 = arith.constant 1 : index
    %c0_55 = arith.constant 0 : index
    %97 = vector.load %arg5[%c0_52, %c0_53, %c1_54, %c0_55] : memref<1x1x9x128xf32, #tpu.memory_space<vmem>>, vector<1x1x1x128xf32>
    %98 = vector.shape_cast %97 : vector<1x1x1x128xf32> to vector<1x128xf32>
    %99 = vector.shape_cast %96 : vector<1x128xf32> to vector<1x1x1x128xf32>
    tpu.vector_store %arg5[%c0_52, %c0_53, %c1_54, %c0_55], %99 {strides = array<i32>} : memref<1x1x9x128xf32, #tpu.memory_space<vmem>>, vector<1x1x1x128xf32>,
    %c0_56 = arith.constant 0 : index
    %c0_57 = arith.constant 0 : index
    %c2_58 = arith.constant 2 : index
    %c0_59 = arith.constant 0 : index
    %100 = vector.load %arg5[%c0_56, %c0_57, %c2_58, %c0_59] : memref<1x1x9x128xf32, #tpu.memory_space<vmem>>, vector<1x1x1x128xf32>
    %101 = vector.shape_cast %100 : vector<1x1x1x128xf32> to vector<1x128xf32>
    %102 = arith.addf %101, %81 : vector<1x128xf32>
    %c0_60 = arith.constant 0 : index
    %c0_61 = arith.constant 0 : index
    %c2_62 = arith.constant 2 : index
    %c0_63 = arith.constant 0 : index
    %103 = vector.load %arg5[%c0_60, %c0_61, %c2_62, %c0_63] : memref<1x1x9x128xf32, #tpu.memory_space<vmem>>, vector<1x1x1x128xf32>
    %104 = vector.shape_cast %103 : vector<1x1x1x128xf32> to vector<1x128xf32>
    %105 = vector.shape_cast %102 : vector<1x128xf32> to vector<1x1x1x128xf32>
    tpu.vector_store %arg5[%c0_60, %c0_61, %c2_62, %c0_63], %105 {strides = array<i32>} : memref<1x1x9x128xf32, #tpu.memory_space<vmem>>, vector<1x1x1x128xf32>,
    %c0_64 = arith.constant 0 : index
    %c0_65 = arith.constant 0 : index
    %c3_66 = arith.constant 3 : index
    %c0_67 = arith.constant 0 : index
    %106 = vector.load %arg5[%c0_64, %c0_65, %c3_66, %c0_67] : memref<1x1x9x128xf32, #tpu.memory_space<vmem>>, vector<1x1x1x128xf32>
    %107 = vector.shape_cast %106 : vector<1x1x1x128xf32> to vector<1x128xf32>
    %108 = arith.addf %107, %48 : vector<1x128xf32>
    %c0_68 = arith.constant 0 : index
    %c0_69 = arith.constant 0 : index
    %c3_70 = arith.constant 3 : index
    %c0_71 = arith.constant 0 : index
    %109 = vector.load %arg5[%c0_68, %c0_69, %c3_70, %c0_71] : memref<1x1x9x128xf32, #tpu.memory_space<vmem>>, vector<1x1x1x128xf32>
    %110 = vector.shape_cast %109 : vector<1x1x1x128xf32> to vector<1x128xf32>
    %111 = vector.shape_cast %108 : vector<1x128xf32> to vector<1x1x1x128xf32>
    tpu.vector_store %arg5[%c0_68, %c0_69, %c3_70, %c0_71], %111 {strides = array<i32>} : memref<1x1x9x128xf32, #tpu.memory_space<vmem>>, vector<1x1x1x128xf32>,
    %c0_72 = arith.constant 0 : index
    %c0_73 = arith.constant 0 : index
    %c4 = arith.constant 4 : index
    %c0_74 = arith.constant 0 : index
    %112 = vector.load %arg5[%c0_72, %c0_73, %c4, %c0_74] : memref<1x1x9x128xf32, #tpu.memory_space<vmem>>, vector<1x1x1x128xf32>
    %113 = vector.shape_cast %112 : vector<1x1x1x128xf32> to vector<1x128xf32>
    %114 = arith.addf %113, %66 : vector<1x128xf32>
    %c0_75 = arith.constant 0 : index
    %c0_76 = arith.constant 0 : index
    %c4_77 = arith.constant 4 : index
    %c0_78 = arith.constant 0 : index
    %115 = vector.load %arg5[%c0_75, %c0_76, %c4_77, %c0_78] : memref<1x1x9x128xf32, #tpu.memory_space<vmem>>, vector<1x1x1x128xf32>
    %116 = vector.shape_cast %115 : vector<1x1x1x128xf32> to vector<1x128xf32>
    %117 = vector.shape_cast %114 : vector<1x128xf32> to vector<1x1x1x128xf32>
    tpu.vector_store %arg5[%c0_75, %c0_76, %c4_77, %c0_78], %117 {strides = array<i32>} : memref<1x1x9x128xf32, #tpu.memory_space<vmem>>, vector<1x1x1x128xf32>,
    %c0_79 = arith.constant 0 : index
    %c0_80 = arith.constant 0 : index
    %c5 = arith.constant 5 : index
    %c0_81 = arith.constant 0 : index
    %118 = vector.load %arg5[%c0_79, %c0_80, %c5, %c0_81] : memref<1x1x9x128xf32, #tpu.memory_space<vmem>>, vector<1x1x1x128xf32>
    %119 = vector.shape_cast %118 : vector<1x1x1x128xf32> to vector<1x128xf32>
    %120 = arith.addf %119, %84 : vector<1x128xf32>
    %c0_82 = arith.constant 0 : index
    %c0_83 = arith.constant 0 : index
    %c5_84 = arith.constant 5 : index
    %c0_85 = arith.constant 0 : index
    %121 = vector.load %arg5[%c0_82, %c0_83, %c5_84, %c0_85] : memref<1x1x9x128xf32, #tpu.memory_space<vmem>>, vector<1x1x1x128xf32>
    %122 = vector.shape_cast %121 : vector<1x1x1x128xf32> to vector<1x128xf32>
    %123 = vector.shape_cast %120 : vector<1x128xf32> to vector<1x1x1x128xf32>
    tpu.vector_store %arg5[%c0_82, %c0_83, %c5_84, %c0_85], %123 {strides = array<i32>} : memref<1x1x9x128xf32, #tpu.memory_space<vmem>>, vector<1x1x1x128xf32>,
    %c0_86 = arith.constant 0 : index
    %c0_87 = arith.constant 0 : index
    %c6 = arith.constant 6 : index
    %c0_88 = arith.constant 0 : index
    %124 = vector.load %arg5[%c0_86, %c0_87, %c6, %c0_88] : memref<1x1x9x128xf32, #tpu.memory_space<vmem>>, vector<1x1x1x128xf32>
    %125 = vector.shape_cast %124 : vector<1x1x1x128xf32> to vector<1x128xf32>
    %126 = arith.addf %125, %51 : vector<1x128xf32>
    %c0_89 = arith.constant 0 : index
    %c0_90 = arith.constant 0 : index
    %c6_91 = arith.constant 6 : index
    %c0_92 = arith.constant 0 : index
    %127 = vector.load %arg5[%c0_89, %c0_90, %c6_91, %c0_92] : memref<1x1x9x128xf32, #tpu.memory_space<vmem>>, vector<1x1x1x128xf32>
    %128 = vector.shape_cast %127 : vector<1x1x1x128xf32> to vector<1x128xf32>
    %129 = vector.shape_cast %126 : vector<1x128xf32> to vector<1x1x1x128xf32>
    tpu.vector_store %arg5[%c0_89, %c0_90, %c6_91, %c0_92], %129 {strides = array<i32>} : memref<1x1x9x128xf32, #tpu.memory_space<vmem>>, vector<1x1x1x128xf32>,
    %c0_93 = arith.constant 0 : index
    %c0_94 = arith.constant 0 : index
    %c7 = arith.constant 7 : index
    %c0_95 = arith.constant 0 : index
    %130 = vector.load %arg5[%c0_93, %c0_94, %c7, %c0_95] : memref<1x1x9x128xf32, #tpu.memory_space<vmem>>, vector<1x1x1x128xf32>
    %131 = vector.shape_cast %130 : vector<1x1x1x128xf32> to vector<1x128xf32>
    %132 = arith.addf %131, %69 : vector<1x128xf32>
    %c0_96 = arith.constant 0 : index
    %c0_97 = arith.constant 0 : index
    %c7_98 = arith.constant 7 : index
    %c0_99 = arith.constant 0 : index
    %133 = vector.load %arg5[%c0_96, %c0_97, %c7_98, %c0_99] : memref<1x1x9x128xf32, #tpu.memory_space<vmem>>, vector<1x1x1x128xf32>
    %134 = vector.shape_cast %133 : vector<1x1x1x128xf32> to vector<1x128xf32>
    %135 = vector.shape_cast %132 : vector<1x128xf32> to vector<1x1x1x128xf32>
    tpu.vector_store %arg5[%c0_96, %c0_97, %c7_98, %c0_99], %135 {strides = array<i32>} : memref<1x1x9x128xf32, #tpu.memory_space<vmem>>, vector<1x1x1x128xf32>,
    %c0_100 = arith.constant 0 : index
    %c0_101 = arith.constant 0 : index
    %c8 = arith.constant 8 : index
    %c0_102 = arith.constant 0 : index
    %136 = vector.load %arg5[%c0_100, %c0_101, %c8, %c0_102] : memref<1x1x9x128xf32, #tpu.memory_space<vmem>>, vector<1x1x1x128xf32>
    %137 = vector.shape_cast %136 : vector<1x1x1x128xf32> to vector<1x128xf32>
    %138 = arith.addf %137, %87 : vector<1x128xf32>
    %c0_103 = arith.constant 0 : index
    %c0_104 = arith.constant 0 : index
    %c8_105 = arith.constant 8 : index
    %c0_106 = arith.constant 0 : index
    %139 = vector.load %arg5[%c0_103, %c0_104, %c8_105, %c0_106] : memref<1x1x9x128xf32, #tpu.memory_space<vmem>>, vector<1x1x1x128xf32>
    %140 = vector.shape_cast %139 : vector<1x1x1x128xf32> to vector<1x128xf32>
    %141 = vector.shape_cast %138 : vector<1x128xf32> to vector<1x1x1x128xf32>
    tpu.vector_store %arg5[%c0_103, %c0_104, %c8_105, %c0_106], %141 {strides = array<i32>} : memref<1x1x9x128xf32, #tpu.memory_space<vmem>>, vector<1x1x1x128xf32>,
    return
  }
  func.func @transform_0(%arg0: i32, %arg1: i32, %arg2: i32) -> (i32, i32, i32, i32) {
    %c1_i32 = arith.constant 1 : i32
    %0 = arith.muli %arg1, %c1_i32 : i32
    %1 = arith.addi %0, %arg2 : i32
    %c0_i32 = arith.constant 0 : i32
    %c0_i32_0 = arith.constant 0 : i32
    %c0_i32_1 = arith.constant 0 : i32
    return %arg0, %c0_i32, %1, %c0_i32_0 : i32, i32, i32, i32
  }
  func.func @transform_1(%arg0: i32, %arg1: i32, %arg2: i32) -> (i32, i32, i32) {
    %c1_i32 = arith.constant 1 : i32
    %0 = arith.muli %arg1, %c1_i32 : i32
    %1 = arith.addi %0, %arg2 : i32
    %c0_i32 = arith.constant 0 : i32
    %c0_i32_0 = arith.constant 0 : i32
    return %arg0, %1, %c0_i32 : i32, i32, i32
  }
  func.func @transform_2(%arg0: i32, %arg1: i32, %arg2: i32) -> (i32, i32, i32, i32) {
    %c0_i32 = arith.constant 0 : i32
    %c0_i32_0 = arith.constant 0 : i32
    %c0_i32_1 = arith.constant 0 : i32
    return %arg0, %arg1, %c0_i32, %c0_i32_0 : i32, i32, i32, i32
  }
}

</mosaic_0001>

<bundles_post_ra>
// kernel: dice_forward.1
= control target key start
LH: loop header
LB: loop body
LE: loop exit
PB: predicated region body
PF: predicated region fallthrough
CT: control target
= control target key end

     0   :  { %s730_s9 = smov 0   ;;  %s732_s10 = smov 0   ;;  %s890_s0 = inlined_call_operand.vmem [shape: f32[2,4,32,128], index: 0, kind: input, shape index: {}]   ;;  %s891_s1 = inlined_call_operand.vmem [shape: s32[2,32,128], index: 1, kind: input, shape index: {}]   ;;  %s892_s2 = inlined_call_operand.vmem [shape: f32[2,1,9,128], index: 2, kind: output, shape index: {}]  }
   0x1   :  { %s734_s11 = smov 0  }
   0x2 LB: > { %s31_s12 = sadd.s32 1, %s707_s10  ;;  %p615_p0 = scmp.ge.s32.totalorder %s711_s11, 1  ;;  %s711_s11 = sphi %s734_s11, %s12_s11   ;;  %s707_s10 = sphi %s732_s10, %s894_s10   ;;  %s703_s9 = sphi %s730_s9, %s893_s9  }
   0x3   : > { %p33_p1 = scmp.ge.s32.totalorder %s31_s12, 2  ;;  %p165_p2 = scmp.lt.s32.totalorder %s711_s11, 3 }
   0x5   : > { %s896_s12 = smov (%p33_p1, %s31_s12), 0  ;;  %p166_p3 = pnand %p615_p0, %p165_p2 }
   0x6   : > { %p208_p4 = scmp.lt.s32.totalorder (!%p166_p3), %s703_s9, 1 }
   0x7   : > { %169 = sbr.rel (%p166_p3) target bundleno = 72 (0x48), region = 28 }
   0xc   : > { %s898_s9 = smov (!%p208_p4, %s703_s9), 1  ;;  %v713_v0 = vmov 0.0   ;;  %v714_v13 = vmov 0  }
   0xd   : > { %s662_s13 = sshll.u32 %s898_s9, 4  ;;  %s660_s14 = sshll.u32 %s898_s9, 7 }
   0xe   : > { %s751_s17 = scalar_lea.vmem %s892_s2, %s662_s13  ;;  %s756_s20 = scalar_lea.vmem %s890_s0, %s660_s14 }
   0xf   : > { %243 = vst [vmem:[%s751_s17] sm:$0xff] %v713_v0  ;;  %s661_s21 = sshll.u32 %s898_s9, 5  ;;  %v249_v1 = vld [vmem:[%s756_s20] sm:$0xff]  ;;  %v250_v2 = vld [vmem:[%s756_s20 + $0x8] sm:$0xff]  ;;  %v251_v3 = vld [vmem:[%s756_s20 + $0x10] sm:$0xff] }
  0x10   : > { %244 = vst [vmem:[%s751_s17 + $0x8] sm:$0x1] %v713_v0  ;;  %s768_s24 = scalar_lea.vmem %s891_s1, %s661_s21  ;;  %v252_v4 = vld [vmem:[%s756_s20 + $0x18] sm:$0xff]  ;;  %v622_v5 = vld [vmem:[%s756_s20 + $0x20] sm:$0xff]  ;;  %v623_v6 = vld [vmem:[%s756_s20 + $0x28] sm:$0xff] }
  0x11   : > { %v774_v7 = vld [vmem:[%s768_s24] sm:$0xff]  ;;  %v777_v8 = vld [vmem:[%s768_s24 + $0x8] sm:$0xff]  ;;  %vm258_vm0 = vcmp.gt.f32.partialorder %v622_v5, %v249_v1  ;;  %vm259_vm1 = vcmp.gt.f32.partialorder %v623_v6, %v250_v2  ;;  %v624_v9 = vld [vmem:[%s756_s20 + $0x30] sm:$0xff] }
  0x12   : > { %v625_v10 = vld [vmem:[%s756_s20 + $0x38] sm:$0xff]  ;;  %v262_v11 = vsel %vm258_vm0, %v622_v5, %v249_v1  ;;  %v263_v12 = vsel %vm259_vm1, %v623_v6, %v250_v2  ;;  %v266_v14 = vsel %vm258_vm0, 1, %v714_v13  ;;  %v267_v15 = vsel %vm259_vm1, 1, %v714_v13  ;;  %v626_v16 = vld [vmem:[%s756_s20 + $0x40] sm:$0xff]  ;;  %v627_v17 = vld [vmem:[%s756_s20 + $0x48] sm:$0xff] }
  0x13   : > { %vm260_vm2 = vcmp.gt.f32.partialorder %v624_v9, %v251_v3  ;;  %vm261_vm3 = vcmp.gt.f32.partialorder %v625_v10, %v252_v4  ;;  %v628_v18 = vld [vmem:[%s756_s20 + $0x50] sm:$0xff]  ;;  %vm312_vm4 = vcmp.eq.s32.totalorder %v774_v7, 1  ;;  %vm313_vm5 = vcmp.eq.s32.totalorder %v777_v8, 1  ;;  %v629_v23 = vld [vmem:[%s756_s20 + $0x58] sm:$0xff]  ;;  %v630_v24 = vld [vmem:[%s756_s20 + $0x60] sm:$0xff] }
  0x14   : > { %v264_v19 = vsel %vm260_vm2, %v624_v9, %v251_v3  ;;  %v265_v20 = vsel %vm261_vm3, %v625_v10, %v252_v4  ;;  %v268_v21 = vsel %vm260_vm2, 1, %v714_v13  ;;  %v269_v22 = vsel %vm261_vm3, 1, %v714_v13  ;;  %v631_v25 = vld [vmem:[%s756_s20 + $0x68] sm:$0xff]  ;;  %v632_v26 = vld [vmem:[%s756_s20 + $0x70] sm:$0xff]  ;;  %v633_v27 = vld [vmem:[%s756_s20 + $0x78] sm:$0xff] }
  0x15   : > { %vm275_vm6 = vcmp.gt.f32.partialorder %v626_v16, %v262_v11  ;;  %vm276_vm7 = vcmp.gt.f32.partialorder %v627_v17, %v263_v12  ;;  %vm277_vm8 = vcmp.gt.f32.partialorder %v628_v18, %v264_v19  ;;  %vm278_vm9 = vcmp.gt.f32.partialorder %v629_v23, %v265_v20  ;;  %v792_v36 = vld [vmem:[%s768_s24 + $0x10] sm:$0xff]  ;;  %v795_v37 = vld [vmem:[%s768_s24 + $0x18] sm:$0xff] }
  0x16   : > { %v279_v28 = vsel %vm275_vm6, %v626_v16, %v262_v11  ;;  %v280_v29 = vsel %vm276_vm7, %v627_v17, %v263_v12  ;;  %v281_v30 = vsel %vm277_vm8, %v628_v18, %v264_v19  ;;  %v282_v31 = vsel %vm278_vm9, %v629_v23, %v265_v20 }
  0x17   : > { %v283_v32 = vsel %vm275_vm6, 2, %v266_v14  ;;  %v284_v33 = vsel %vm276_vm7, 2, %v267_v15  ;;  %v285_v34 = vsel %vm277_vm8, 2, %v268_v21  ;;  %v286_v35 = vsel %vm278_vm9, 2, %v269_v22 }
  0x18   : > { %vm292_vm10 = vcmp.gt.f32.partialorder %v630_v24, %v279_v28  ;;  %vm293_vm11 = vcmp.gt.f32.partialorder %v631_v25, %v280_v29  ;;  %vm294_vm12 = vcmp.gt.f32.partialorder %v632_v26, %v281_v30  ;;  %vm295_vm13 = vcmp.gt.f32.partialorder %v633_v27, %v282_v31 }
  0x19   : > { %v296_v38 = vsel %vm292_vm10, 3, %v283_v32  ;;  %v297_v39 = vsel %vm293_vm11, 3, %v284_v33  ;;  %v298_v40 = vsel %vm294_vm12, 3, %v285_v34  ;;  %v299_v41 = vsel %vm295_vm13, 3, %v286_v35 }
  0x1a   : > { %vm300_vm14 = vcmp.eq.s32.totalorder %v296_v38, 1  ;;  %vm301_vm15 = vcmp.eq.s32.totalorder %v297_v39, 1  ;;  %vm302_vm0 = vcmp.eq.s32.totalorder %v298_v40, 1  ;;  %vm303_vm1 = vcmp.eq.s32.totalorder %v299_v41, 1 }
  0x1b   : > { %v798_v42 = vsel %vm300_vm14, 1.0, %v713_v0  ;;  %v635_v43 = vsel %vm301_vm15, 1.0, %v713_v0  ;;  %v802_v44 = vsel %vm302_vm0, 1.0, %v713_v0  ;;  %v805_v45 = vsel %vm303_vm1, 1.0, %v713_v0 }
  0x1c   : > { %vm314_vm2 = vcmp.eq.s32.totalorder %v792_v36, 1  ;;  %vm315_vm3 = vcmp.eq.s32.totalorder %v795_v37, 1  ;;  %v812_v46 = vsel %vm312_vm4, 1.0, %v713_v0  ;;  %v817_v47 = vsel %vm313_vm5, 1.0, %v713_v0 }
  0x1d   : > { %v820_v48 = vsel %vm314_vm2, 1.0, %v713_v0  ;;  %v823_v49 = vsel %vm315_vm3, 1.0, %v713_v0  ;;  %v324_v50 = vmul.f32 %v812_v46, %v798_v42  ;;  %v325_v51 = vmul.f32 %v817_v47, %v635_v43 }
  0x1e   : > { %v326_v52 = vmul.f32 %v820_v48, %v802_v44  ;;  %v327_v53 = vmul.f32 %v823_v49, %v805_v45  ;;  %vm358_vm4 = vcmp.eq.s32.totalorder %v296_v38, 2  ;;  %vm359_vm5 = vcmp.eq.s32.totalorder %v297_v39, 2 }
  0x1f   : > { %v328_v54 = vadd.f32 %v325_v51, %v324_v50  ;;  %vm360_vm6 = vcmp.eq.s32.totalorder %v298_v40, 2  ;;  %vm361_vm7 = vcmp.eq.s32.totalorder %v299_v41, 2  ;;  %v642_v55 = vsel %vm358_vm4, 1.0, %v713_v0 }
  0x20   : > { %v643_v56 = vsel %vm359_vm5, 1.0, %v713_v0  ;;  %v644_v57 = vsel %vm360_vm6, 1.0, %v713_v0  ;;  %v645_v58 = vsel %vm361_vm7, 1.0, %v713_v0  ;;  %vm370_vm8 = vcmp.eq.s32.totalorder %v774_v7, 2 }
  0x21   : > { %v329_v59 = vadd.f32 %v328_v54, %v326_v52  ;;  %vm371_vm9 = vcmp.eq.s32.totalorder %v777_v8, 2  ;;  %vm372_vm10 = vcmp.eq.s32.totalorder %v792_v36, 2  ;;  %vm373_vm11 = vcmp.eq.s32.totalorder %v795_v37, 2 }
  0x22   : > { %v646_v60 = vsel %vm370_vm8, 1.0, %v713_v0  ;;  %v647_v61 = vsel %vm371_vm9, 1.0, %v713_v0  ;;  %v648_v62 = vsel %vm372_vm10, 1.0, %v713_v0  ;;  %v649_v63 = vsel %vm373_vm11, 1.0, %v713_v0 }
  0x23   : > { %v330_v1 = vadd.f32 %v329_v59, %v327_v53  ;;  %v382_v2 = vmul.f32 %v646_v60, %v642_v55  ;;  %v383_v3 = vmul.f32 %v647_v61, %v643_v56  ;;  %v384_v4 = vmul.f32 %v648_v62, %v644_v57 }
  0x24   : > { %v385_v5 = vmul.f32 %v649_v63, %v645_v58  ;;  %vm416_vm12 = vcmp.eq.s32.totalorder %v296_v38, 3  ;;  %vm417_vm13 = vcmp.eq.s32.totalorder %v297_v39, 3  ;;  %vm418_vm14 = vcmp.eq.s32.totalorder %v298_v40, 3 }
  0x25   : > { %v331_v6 = vrot.slane %v330_v1, 4  ;;  %v386_v9 = vadd.f32 %v383_v3, %v382_v2  ;;  %vm419_vm15 = vcmp.eq.s32.totalorder %v299_v41, 3  ;;  %v650_v10 = vsel %vm416_vm12, 1.0, %v713_v0 }
  0x26   : > { %v651_v11 = vsel %vm417_vm13, 1.0, %v713_v0  ;;  %v652_v12 = vsel %vm418_vm14, 1.0, %v713_v0  ;;  %v653_v13 = vsel %vm419_vm15, 1.0, %v713_v0  ;;  %vm428_vm0 = vcmp.eq.s32.totalorder %v774_v7, 3 }
  0x27   : > { %v332_v14 = vadd.f32 %v331_v6, %v330_v1  ;;  %v387_v15 = vadd.f32 %v386_v9, %v384_v4  ;;  %vm429_vm1 = vcmp.eq.s32.totalorder %v777_v8, 3  ;;  %vm430_vm2 = vcmp.eq.s32.totalorder %v792_v36, 3  ;;  %v474_v36 = vld [vmem:[%s751_s17] sm:$0x1] }
  0x28   : > { %vm431_vm3 = vcmp.eq.s32.totalorder %v795_v37, 3  ;;  %v654_v16 = vsel %vm428_vm0, 1.0, %v713_v0  ;;  %v655_v17 = vsel %vm429_vm1, 1.0, %v713_v0  ;;  %v656_v18 = vsel %vm430_vm2, 1.0, %v713_v0 }
  0x29   : > { %v333_v19 = vrot.slane %v332_v14, 2  ;;  %v388_v20 = vadd.f32 %v387_v15, %v385_v5  ;;  %v657_v21 = vsel %vm431_vm3, 1.0, %v713_v0  ;;  %v440_v22 = vmul.f32 %v654_v16, %v650_v10 }
  0x2a   : > { %v441_v7 = vmul.f32 %v655_v17, %v651_v11  ;;  %v442_v23 = vmul.f32 %v656_v18, %v652_v12  ;;  %v443_v24 = vmul.f32 %v657_v21, %v653_v13  ;;  %v338_v8 = vadd.f32 %v635_v43, %v798_v42 }
  0x2b   : > { %v334_v25 = vadd.f32 %v333_v19, %v332_v14  ;;  %v389_v26 = vrot.slane %v388_v20, 4  ;;  %v396_v27 = vadd.f32 %v643_v56, %v642_v55  ;;  %v454_v28 = vadd.f32 %v651_v11, %v650_v10 }
  0x2c   : > { %v444_v29 = vadd.f32 %v441_v7, %v440_v22  ;;  %v339_v30 = vadd.f32 %v802_v44, %v338_v8  ;;  %v348_v31 = vadd.f32 %v817_v47, %v812_v46  ;;  %v406_v32 = vadd.f32 %v647_v61, %v646_v60  ;;  %v486_v22 = vld [vmem:[%s751_s17 + $0x4] sm:$0x1] }
  0x2d   : > { %v335_v33 = vrot.slane %v334_v25, 1  ;;  %v390_v0 = vadd.f32 %v389_v26, %v388_v20  ;;  %v397_v34 = vadd.f32 %v644_v57, %v396_v27  ;;  %v455_v35 = vadd.f32 %v652_v12, %v454_v28  ;;  %v483_v20 = vld [vmem:[%s751_s17 + $0x3] sm:$0x1]  ;;  %v489_v27 = vld [vmem:[%s751_s17 + $0x5] sm:$0x1] }
  0x2e   : > { %v445_v37 = vadd.f32 %v444_v29, %v442_v23  ;;  %v340_v38 = vadd.f32 %v805_v45, %v339_v30  ;;  %v349_v39 = vadd.f32 %v820_v48, %v348_v31  ;;  %v407_v40 = vadd.f32 %v648_v62, %v406_v32  ;;  %v477_v62 = vld [vmem:[%s751_s17 + $0x1] sm:$0x1]  ;;  %v492_v32 = vld [vmem:[%s751_s17 + $0x6] sm:$0x1] }
  0x2f   : > { %v336_v41 = vadd.f32 %v335_v33, %v334_v25  ;;  %v391_v42 = vrot.slane %v390_v0, 2  ;;  %v398_v43 = vadd.f32 %v645_v58, %v397_v34  ;;  %v456_v44 = vadd.f32 %v653_v13, %v455_v35 }
  0x30   : > { %v446_v50 = vadd.f32 %v445_v37, %v443_v24  ;;  %v341_v51 = vrot.slane %v340_v38, 4  ;;  %v350_v46 = vadd.f32 %v823_v49, %v349_v39  ;;  %v408_v47 = vadd.f32 %v649_v63, %v407_v40  ;;  %v495_v37 = vld [vmem:[%s751_s17 + $0x7] sm:$0x1] }
  0x31   : > { %v475_v52 = vadd.f32 %v474_v36, %v336_v41  ;;  %v392_v53 = vadd.f32 %v391_v42, %v390_v0  ;;  %v399_v54 = vrot.slane %v398_v43, 4  ;;  %v457_v55 = vrot.slane %v456_v44, 4 }
  0x32   : > { %v447_v56 = vrot.slane %v446_v50, 4  ;;  %v342_v45 = vadd.f32 %v341_v51, %v340_v38  ;;  %v351_v57 = vrot.slane %v350_v46, 4  ;;  %v409_v48 = vrot.slane %v408_v47, 4  ;;  %v498_v51 = vld [vmem:[%s751_s17 + $0x8] sm:$0x1] }
  0x33   : > { %476 = vst [vmem:[%s751_s17] sm:$0x1] %v475_v52  ;;  %v393_v59 = vrot.slane %v392_v53, 1  ;;  %v400_v60 = vadd.f32 %v399_v54, %v398_v43  ;;  %v458_v61 = vadd.f32 %v457_v55, %v456_v44  ;;  %v464_v58 = vadd.f32 %v655_v17, %v654_v16 }
  0x34   : > { %v448_v1 = vadd.f32 %v447_v56, %v446_v50  ;;  %v343_v2 = vrot.slane %v342_v45, 2  ;;  %v352_v3 = vadd.f32 %v351_v57, %v350_v46  ;;  %v410_v49 = vadd.f32 %v409_v48, %v408_v47 }
  0x35   : > { %v394_v63 = vadd.f32 %v393_v59, %v392_v53  ;;  %v401_v4 = vrot.slane %v400_v60, 2  ;;  %v459_v5 = vrot.slane %v458_v61, 2  ;;  %v465_v6 = vadd.f32 %v656_v18, %v464_v58 }
  0x36   : > { %v449_v9 = vrot.slane %v448_v1, 2  ;;  %v344_v10 = vadd.f32 %v343_v2, %v342_v45  ;;  %v353_v11 = vrot.slane %v352_v3, 2  ;;  %v411_v12 = vrot.slane %v410_v49, 2 }
  0x37   : > { %v478_v13 = vadd.f32 %v477_v62, %v394_v63  ;;  %v402_v14 = vadd.f32 %v401_v4, %v400_v60  ;;  %v460_v15 = vadd.f32 %v459_v5, %v458_v61  ;;  %v466_v16 = vadd.f32 %v657_v21, %v465_v6  ;;  %v480_v21 = vld [vmem:[%s751_s17 + $0x2] sm:$0x1] }
  0x38   : > { %v450_v17 = vadd.f32 %v449_v9, %v448_v1  ;;  %v345_v19 = vrot.slane %v344_v10, 1  ;;  %v354_v7 = vadd.f32 %v353_v11, %v352_v3  ;;  %v412_v23 = vadd.f32 %v411_v12, %v410_v49 }
  0x39   : > { %479 = vst [vmem:[%s751_s17 + $0x1] sm:$0x1] %v478_v13  ;;  %v403_v24 = vrot.slane %v402_v14, 1  ;;  %v461_v18 = vrot.slane %v460_v15, 1  ;;  %v467_v8 = vrot.slane %v466_v16, 4 }
  0x3a   : > { %v451_v25 = vrot.slane %v450_v17, 1  ;;  %v346_v26 = vadd.f32 %v345_v19, %v344_v10  ;;  %v355_v28 = vrot.slane %v354_v7, 1  ;;  %v413_v29 = vrot.slane %v412_v23, 1 }
  0x3b   : > { %v404_v30 = vadd.f32 %v403_v24, %v402_v14  ;;  %v462_v31 = vadd.f32 %v461_v18, %v460_v15  ;;  %v468_v33 = vadd.f32 %v467_v8, %v466_v16 }
  0x3c   : > { %v452_v0 = vadd.f32 %v451_v25, %v450_v17  ;;  %v484_v34 = vadd.f32 %v483_v20, %v346_v26  ;;  %v356_v35 = vadd.f32 %v355_v28, %v354_v7  ;;  %v414_v36 = vadd.f32 %v413_v29, %v412_v23 }
  0x3d   : > { %v487_v38 = vadd.f32 %v486_v22, %v404_v30  ;;  %v490_v39 = vadd.f32 %v489_v27, %v462_v31  ;;  %v469_v40 = vrot.slane %v468_v33, 2 }
  0x3e   : > { %v481_v41 = vadd.f32 %v480_v21, %v452_v0  ;;  %485 = vst [vmem:[%s751_s17 + $0x3] sm:$0x1] %v484_v34  ;;  %v493_v42 = vadd.f32 %v492_v32, %v356_v35  ;;  %v496_v43 = vadd.f32 %v495_v37, %v414_v36 }
  0x3f   : > { %488 = vst [vmem:[%s751_s17 + $0x4] sm:$0x1] %v487_v38  ;;  %v470_v44 = vadd.f32 %v469_v40, %v468_v33 }
  0x40   : > { %482 = vst [vmem:[%s751_s17 + $0x2] sm:$0x1] %v481_v41 }
  0x41   : > { %491 = vst [vmem:[%s751_s17 + $0x5] sm:$0x1] %v490_v39  ;;  %v471_v50 = vrot.slane %v470_v44, 1 }
  0x42   : > { %494 = vst [vmem:[%s751_s17 + $0x6] sm:$0x1] %v493_v42 }
  0x43   : > { %497 = vst [vmem:[%s751_s17 + $0x7] sm:$0x1] %v496_v43  ;;  %v472_v46 = vadd.f32 %v471_v50, %v470_v44 }
  0x45   : > { %v499_v47 = vadd.f32 %v498_v51, %v472_v46 }
  0x47   : > { %500 = vst [vmem:[%s751_s17 + $0x8] sm:$0x1] %v499_v47 }
  0x48 PF: > { %s12_s11 = sadd.s32 1, %s711_s11   ;;  %s893_s9 = smov %s707_s10 }
  0x49   : > { %p9_p5 = scmp.ge.s32.totalorder %s12_s11, 4   ;;  %s894_s10 = smov %s896_s12 }
  0x4b   :  { %11 = sbr.rel (!%p9_p5) target bundleno = 2 (0x2), region = 68 }

</bundles_post_ra>
